<compile_context>
chip_gen: v7x
topology: tpu7x:2x2x1
jax: 0.10.0
libtpu: 0.0.40
codegen_flags: <defaults>
</compile_context>

<pallas_src>
import math
from functools import partial

import jax
import jax.numpy as jnp
from jax.experimental import pallas as pl
from jax.experimental.pallas import tpu as pltpu

EPS = 1e-5
MINSCALE = 0.1
C_PAD = 128      # lane-dense channel width for every activation / weight
RING = 1         # zero ring kept around every spatial frame (covers k in {1,3})

_ROLL_NEG = True  # pltpu.roll sign convention, verified once by a probe kernel


def round_up(x, m):
    return ((x + m - 1) // m) * m


# ----------------------------- parameter folding ----------------------------

def damper(kh, kw):
    """get_damper(): scales kernel rows along H; identity for kh == 1."""
    t = jnp.ones((kh, kw), jnp.float32)
    center = (kh - 1.0) / 2.0
    if center >= 1:
        scales = jnp.array(
            [-(1.0 - MINSCALE) * abs(i - center) / center + 1.0 for i in range(kh)],
            jnp.float32)
        t = t * scales[:, None]
    return t


def fold_bn(bn):
    gamma, beta, mean, var = bn
    s = gamma / jnp.sqrt(var + EPS)
    return s, beta - mean * s


def fold_conv_taps(w_oihw, bn, cin_pad=C_PAD, cout_pad=C_PAD, dtype=jnp.bfloat16):
    """damper * BN-scale folded weight -> (kh*kw, cin_pad, cout_pad) taps + bias."""
    co, ci, kh, kw = w_oihw.shape
    s, b = fold_bn(bn)
    wd = w_oihw * damper(kh, kw)[None, None] * s[:, None, None, None]
    wp = jnp.zeros((cout_pad, cin_pad, kh, kw), jnp.float32).at[:co, :ci].set(wd)
    bp = jnp.zeros((cout_pad,), jnp.float32).at[:co].set(b)
    w_taps = jnp.transpose(wp, (2, 3, 1, 0)).reshape(kh * kw, cin_pad, cout_pad)
    return w_taps.astype(dtype), bp.reshape(1, cout_pad).astype(jnp.float32)


def kaiming_conv(key, co, ci, kh, kw):
    fan_in = ci * kh * kw
    std = math.sqrt(2.0 / fan_in)
    return jax.random.normal(key, (co, ci, kh, kw), jnp.float32) * std


def bn_identity(c):
    # gamma=1, beta=0, running_mean=0, running_var=1 (initialize_weights)
    return (jnp.ones((c,), jnp.float32), jnp.zeros((c,), jnp.float32),
            jnp.zeros((c,), jnp.float32), jnp.ones((c,), jnp.float32))


# ------------------------------- Pallas kernels ------------------------------

def _roll_probe_kernel(x_ref, o_ref):
    o_ref[...] = pltpu.roll(x_ref[...], 1, axis=0)


def _detect_roll_neg():
    """Verify pltpu.roll's sign convention against jnp.roll (runs once, eagerly)."""
    a = jnp.arange(8 * 128, dtype=jnp.float32).reshape(8, 128)
    out = pl.pallas_call(
        _roll_probe_kernel,
        out_shape=jax.ShapeDtypeStruct((8, 128), jnp.float32),
    )(a)
    return bool(jnp.array_equal(out, jnp.roll(a, 1, axis=0)))


def _shift_rows(x, off, mf):
    """y[r] = x[(r + off) mod mf]; exact for every row kept by the valid mask."""
    if off == 0:
        return x
    sh = ((-off) if _ROLL_NEG else off) % mf
    if sh == 0:
        return x
    return pltpu.roll(x, sh, axis=0)


def _frame_mask(mf, hp, wp, h, w):
    """(mf, 1) bool: rows that hold real (non-ring / non-tail) activations."""
    r = jax.lax.broadcasted_iota(jnp.int32, (mf, 1), 0)
    fj = r % wp
    fi = r // wp
    return ((r < hp * wp)
            & (fi >= RING) & (fi < RING + h)
            & (fj >= RING) & (fj < RING + w))


def _tap_offsets(k, wp):
    p = k // 3                      # calc_padding
    return [(di - p) * wp + (dj - p) for di in range(k) for dj in range(k)]


def _conv_taps(x_f32, w_ref, offsets, mf):
    """sum_t roll(x, tap_t) @ W_t  (bf16 MXU, f32 accumulate)."""
    acc = None
    for t, off in enumerate(offsets):
        xt = _shift_rows(x_f32, off, mf)
        part = jnp.dot(xt.astype(jnp.bfloat16), w_ref[t],
                       preferred_element_type=jnp.float32)
        acc = part if acc is None else acc + part
    return acc


def make_block_kernel(mf, hp, wp, h, w, off1, off2, has_sc):
    """Whole BasicBlock fused in one kernel (conv1 output kept in VMEM scratch)."""
    def kernel(x_ref, w1_ref, b1_ref, w2_ref, b2_ref, *rest):
        if has_sc:
            wsc_ref, bsc_ref, o_ref, y_ref = rest
        else:
            o_ref, y_ref = rest
        mask = _frame_mask(mf, hp, wp, h, w)
        x = x_ref[0]                                         # (mf, 128) f32
        # conv1 + bn1 + relu  -> VMEM scratch
        a1 = _conv_taps(x, w1_ref, off1, mf) + b1_ref[...]
        y_ref[...] = jnp.where(mask, jnp.maximum(a1, 0.0), 0.0)
        # conv2 + bn2 (+ shortcut) + relu
        a2 = _conv_taps(y_ref[...], w2_ref, off2, mf) + b2_ref[...]
        if has_sc:
            res = jnp.dot(x.astype(jnp.bfloat16), wsc_ref[0],
                          preferred_element_type=jnp.float32) + bsc_ref[...]
        else:
            res = x
        o_ref[0] = jnp.where(mask, jnp.maximum(a2 + res, 0.0), 0.0)
    return kernel


def block_forward(frame, blk, h, w):
    n, mf, _ = frame.shape
    hp, wp = h + 2 * RING, w + 2 * RING
    k1, k2, has_sc = blk['k1'], blk['k2'], blk['has_sc']
    kernel = make_block_kernel(mf, hp, wp, h, w,
                               _tap_offsets(k1, wp), _tap_offsets(k2, wp), has_sc)
    inputs = [frame, blk['w1'], blk['b1'], blk['w2'], blk['b2']]
    in_specs = [
        pl.BlockSpec((1, mf, C_PAD), lambda i: (i, 0, 0)),
        pl.BlockSpec(blk['w1'].shape, lambda i: (0, 0, 0)),
        pl.BlockSpec((1, C_PAD), lambda i: (0, 0)),
        pl.BlockSpec(blk['w2'].shape, lambda i: (0, 0, 0)),
        pl.BlockSpec((1, C_PAD), lambda i: (0, 0)),
    ]
    if has_sc:
        inputs += [blk['wsc'], blk['bsc']]
        in_specs += [pl.BlockSpec(blk['wsc'].shape, lambda i: (0, 0, 0)),
                     pl.BlockSpec((1, C_PAD), lambda i: (0, 0))]
    return pl.pallas_call(
        kernel,
        out_shape=jax.ShapeDtypeStruct((n, mf, C_PAD), jnp.float32),
        grid=(n,),
        in_specs=in_specs,
        out_specs=pl.BlockSpec((1, mf, C_PAD), lambda i: (i, 0, 0)),
        scratch_shapes=[pltpu.VMEM((mf, C_PAD), jnp.float32)],
        compiler_params=pltpu.CompilerParams(dimension_semantics=("parallel",)),
    )(*inputs)


def _stem_kernel(x_ref, w_ref, b_ref, o_ref):
    y = jnp.dot(x_ref[0].astype(jnp.bfloat16), w_ref[...],
                preferred_element_type=jnp.float32)
    o_ref[0] = jnp.maximum(y + b_ref[...], 0.0)


def stem_forward(patches, w, b):
    n, m, k = patches.shape
    return pl.pallas_call(
        _stem_kernel,
        out_shape=jax.ShapeDtypeStruct((n, m, C_PAD), jnp.float32),
        grid=(n,),
        in_specs=[pl.BlockSpec((1, m, k), lambda i: (i, 0, 0)),
                  pl.BlockSpec((k, C_PAD), lambda i: (0, 0)),
                  pl.BlockSpec((1, C_PAD), lambda i: (0, 0))],
        out_specs=pl.BlockSpec((1, m, C_PAD), lambda i: (i, 0, 0)),
        compiler_params=pltpu.CompilerParams(dimension_semantics=("parallel",)),
    )(patches, w, b)


def _max4_kernel(a_ref, b_ref, c_ref, d_ref, o_ref):
    o_ref[...] = jnp.maximum(jnp.maximum(a_ref[...], b_ref[...]),
                             jnp.maximum(c_ref[...], d_ref[...]))


def maxpool2x2(x_nhwc):
    """MaxPool2d(2, 2, padding=0) on NHWC."""
    n, h, w, c = x_nhwc.shape
    ho, wo = h // 2, w // 2
    views = [x_nhwc[:, di:2 * ho:2, dj:2 * wo:2, :] for di in (0, 1) for dj in (0, 1)]
    spec = pl.BlockSpec((1, ho, wo, c), lambda i: (i, 0, 0, 0))
    return pl.pallas_call(
        _max4_kernel,
        out_shape=jax.ShapeDtypeStruct((n, ho, wo, c), jnp.float32),
        grid=(n,),
        in_specs=[spec] * 4,
        out_specs=spec,
        compiler_params=pltpu.CompilerParams(dimension_semantics=("parallel",)),
    )(*views)


def _ff_gap_kernel(x_ref, w_ref, b_ref, o_ref, *, inv_hw):
    # feed_forward conv1x1 + BN (folded) fused with the global average pool:
    # ring/tail rows of the frame are zero, so a plain row-sum / (H*W) is exact.
    y = jnp.dot(x_ref[0], w_ref[...], preferred_element_type=jnp.float32)
    o_ref[0] = jnp.sum(y, axis=0, keepdims=True) * inv_hw + b_ref[...]


def ff_gap_forward(frame, wff, bff, h, w):
    n, mf, _ = frame.shape
    out = pl.pallas_call(
        partial(_ff_gap_kernel, inv_hw=1.0 / float(h * w)),
        out_shape=jax.ShapeDtypeStruct((n, 1, C_PAD), jnp.float32),
        grid=(n,),
        in_specs=[pl.BlockSpec((1, mf, C_PAD), lambda i: (i, 0, 0)),
                  pl.BlockSpec((C_PAD, C_PAD), lambda i: (0, 0)),
                  pl.BlockSpec((1, C_PAD), lambda i: (0, 0))],
        out_specs=pl.BlockSpec((1, 1, C_PAD), lambda i: (i, 0, 0)),
        compiler_params=pltpu.CompilerParams(dimension_semantics=("parallel",)),
    )(frame, wff, bff)
    return out[:, 0, :]


# --------------------------- frame layout glue (JAX) -------------------------

def frame_rows(h, w):
    return round_up((h + 2 * RING) * (w + 2 * RING), 16)


def embed_frame(x_nhwc, mf):
    """NHWC activation -> zero-ringed, row-flattened, tail-padded frame."""
    n, h, w, c = x_nhwc.shape
    xp = jnp.pad(x_nhwc, ((0, 0), (RING, RING), (RING, RING), (0, 0)))
    hp, wp = h + 2 * RING, w + 2 * RING
    flat = xp.reshape(n, hp * wp, c)
    return jnp.pad(flat, ((0, 0), (0, mf - hp * wp), (0, 0)))


def extract_interior(frame, h, w):
    n, _, c = frame.shape
    hp, wp = h + 2 * RING, w + 2 * RING
    x = frame[:, :hp * wp, :].reshape(n, hp, wp, c)
    return x[:, RING:RING + h, RING:RING + w, :]


def stem_patches(x_nhwc, kh, kw, stride, pad):
    """im2col for the (tiny, 1-channel) stem conv only."""
    n, h, w, c = x_nhwc.shape
    xp = jnp.pad(x_nhwc, ((0, 0), (pad, pad), (pad, pad), (0, 0)))
    ho = (h + 2 * pad - kh) // stride + 1
    wo = (w + 2 * pad - kw) // stride + 1
    taps = [xp[:, i:i + stride * (ho - 1) + 1:stride,
               j:j + stride * (wo - 1) + 1:stride, :]
            for i in range(kh) for j in range(kw)]
    patches = jnp.stack(taps, axis=3)              # (N, Ho, Wo, kh*kw, C)
    return patches.reshape(n, ho * wo, kh * kw * c), ho, wo


# ------------------------------ network building -----------------------------

def build_network(key, config):
    """Raw PyTorch-style init, then damper+BN folded into kernel-ready weights."""
    in_ch = config['input_shape'][1]
    base = config['base_channels']
    n_classes = config['n_classes']
    depth = config['depth']
    nbps = (depth - 2) // 6
    assert nbps * 6 + 2 == depth
    nch = [base, base * 2, base * 4]
    kit = iter(jax.random.split(key, 256))

    params = {'blocks': []}
    arch = []

    # in_c: Conv2dPrune(5x5, stride 2, pad 1) + BN + ReLU  -> (25*Cin, 128) matrix
    w = kaiming_conv(next(kit), nch[0], in_ch, 5, 5)
    wt, b = fold_conv_taps(w, bn_identity(nch[0]), cin_pad=in_ch)
    params['stem'] = {'w': wt.reshape(25 * in_ch, C_PAD), 'b': b}

    cin = nch[0]
    for s_idx, cout in enumerate(nch):
        cfg = config['stage%d' % (s_idx + 1)]
        stage_arch = {'maxpool': list(cfg['maxpool']), 'blocks': []}
        for b_idx in range(nbps):
            k1, k2 = cfg['k1s'][b_idx], cfg['k2s'][b_idx]
            # TODO(synk): frame-conv path supports k in {1,3}; other kernel sizes
            # (k=5 in a block changes the spatial size) would need an im2col path.
            assert k1 in (1, 3) and k2 in (1, 3)
            has_sc = cin != cout
            blk = {}
            w1 = kaiming_conv(next(kit), cout, cin, k1, k1)
            blk['w1'], blk['b1'] = fold_conv_taps(w1, bn_identity(cout))
            w2 = kaiming_conv(next(kit), cout, cout, k2, k2)
            blk['w2'], blk['b2'] = fold_conv_taps(w2, bn_identity(cout))
            if has_sc:
                wsc = kaiming_conv(next(kit), cout, cin, 1, 1)
                blk['wsc'], blk['bsc'] = fold_conv_taps(wsc, bn_identity(cout))
            params['blocks'].append(blk)
            stage_arch['blocks'].append({'k1': k1, 'k2': k2, 'has_sc': has_sc})
            cin = cout
        arch.append(stage_arch)

    # feed_forward: Conv2dPrune(1x1) + BN  (GAP fused into its kernel)
    wff = kaiming_conv(next(kit), n_classes, nch[2], 1, 1)
    wt, b = fold_conv_taps(wff, bn_identity(n_classes), dtype=jnp.float32)
    params['ff'] = {'w': wt.reshape(C_PAD, C_PAD), 'b': b}
    return params, arch


def make_forward(config, arch):
    global _ROLL_NEG
    _ROLL_NEG = _detect_roll_neg()
    n_classes = config['n_classes']

    def forward(params, x_nchw):
        x = jnp.transpose(x_nchw, (0, 2, 3, 1)).astype(jnp.float32)   # NCHW->NHWC
        n = x.shape[0]

        # in_c: Conv2dPrune(5x5, stride 2, pad 1) + BN + ReLU
        patches, h, w = stem_patches(x, 5, 5, 2, 1)
        y = stem_forward(patches, params['stem']['w'], params['stem']['b'])
        frame = embed_frame(y.reshape(n, h, w, C_PAD), frame_rows(h, w))

        bi = 0
        for stage in arch:
            mp = stage['maxpool']
            if 0 in mp:
                pooled = maxpool2x2(extract_interior(frame, h, w))
                h, w = h // 2, w // 2
                frame = embed_frame(pooled, frame_rows(h, w))
            for idx, bcfg in enumerate(stage['blocks']):
                frame = block_forward(frame, {**params['blocks'][bi], **bcfg}, h, w)
                bi += 1
                for mp_pos in mp:
                    if idx + 1 == mp_pos:
                        pooled = maxpool2x2(extract_interior(frame, h, w))
                        h, w = h // 2, w // 2
                        frame = embed_frame(pooled, frame_rows(h, w))

        # feed_forward conv1x1 + BN + AdaptiveAvgPool2d((1,1)) + squeeze
        logits = ff_gap_forward(frame, params['ff']['w'], params['ff']['b'], h, w)
        return logits[:, :n_classes]            # apply_softmax=False

    return jax.jit(forward)


# ----------------------------------- main ------------------------------------

if __name__ == "__main__":
    config = {
        'input_shape': (2, 1, 32, 32),          # (N, C, H, W)
        'n_classes': 10,
        'base_channels': 8,
        'block_type': 'basic',
        'depth': 8,                              # -> 1 BasicBlock per stage
        'stage1': {'maxpool': [1], 'k1s': [3], 'k2s': [3]},
        'stage2': {'maxpool': [],  'k1s': [3], 'k2s': [3]},
        'stage3': {'maxpool': [],  'k1s': [3], 'k2s': [1]},
    }

    key = jax.random.PRNGKey(0)
    kp, kx = jax.random.split(key)
    params, arch = build_network(kp, config)
    x = jax.random.normal(kx, config['input_shape'], jnp.float32)

    forward = make_forward(config, arch)
    logits = jax.block_until_ready(forward(params, x))

    assert logits.shape == (config['input_shape'][0], config['n_classes'])
    assert bool(jnp.all(jnp.isfinite(logits)))
    print("KERNEL_OK")
</pallas_src>

<mosaic_0001>
module attributes {stable_mosaic.version = 11 : i64} {
  func.func @_roll_probe_kernel(%arg0: memref<8x128xf32, #tpu.memory_space<vmem>>, %arg1: memref<8x128xf32, #tpu.memory_space<vmem>>) attributes {dimension_semantics = [], scalar_prefetch = 0 : i64, scratch_operands = 0 : i64, tpu.core_type = #tpu.core_type<tc>} {
    %c0 = arith.constant 0 : index
    %c0_0 = arith.constant 0 : index
    %0 = vector.load %arg0[%c0, %c0_0] : memref<8x128xf32, #tpu.memory_space<vmem>>, vector<8x128xf32>
    %c1_i32 = arith.constant 1 : i32
    %1 = tpu.dynamic_rotate %0 by %c1_i32 dim 0 : vector<8x128xf32>, i32 -> vector<8x128xf32>
    %c0_1 = arith.constant 0 : index
    %c0_2 = arith.constant 0 : index
    %2 = vector.load %arg1[%c0_1, %c0_2] : memref<8x128xf32, #tpu.memory_space<vmem>>, vector<8x128xf32>
    tpu.vector_store %arg1[%c0_1, %c0_2], %1 {strides = array<i32>} : memref<8x128xf32, #tpu.memory_space<vmem>>, vector<8x128xf32>,
    return
  }
}

</mosaic_0001>

<bundles_post_ra>
// kernel: tpu_custom_call.1
= control target key start
LH: loop header
LB: loop body
LE: loop exit
PB: predicated region body
PF: predicated region fallthrough
CT: control target
= control target key end

     0   :  { %6 = vsyncpa [#allocation3], 0  ;;  %s125_s0 = inlined_call_operand.hbm [shape: f32[8,128], index: 0, kind: input, shape index: {}]   ;;  %s126_s1 = inlined_call_operand.hbm [shape: f32[8,128], index: 1, kind: output, shape index: {}]  }
   0x1   :  { %7 = vsyncpa [#allocation4], 0  ;;  %s89_s6 = smov [#allocation2]   ;;  %s41_s10 = scalar_lea.hbm %s125_s0, 128 }
   0x2   :  { %s14_s7 = sshll.u32 %s89_s6, 4  ;;  %p42_p0 = scmp.ne.s32.totalorder %s125_s0, %s41_s10  ;;  %s15_s7 = int_to_ptr.vmem [resolvable:$true] %s14_s7 }
   0x3   :  { %p45_p1 = scmp.lt.u32.totalorder %s41_s10, %s125_s0 }
   0x5   :  { %p47_p2 = pnand %p45_p1, %p42_p0 }
   0x7   :  { %50 = shalt.err (!%p47_p2)
}
   0x8   :  { %s51_s15 = scalar_lea.vmem %s15_s7, 128  ;;  %p56_p4 = scmp.lt.s32.totalorder %s15_s7, %s15_s7 }
   0x9   :  { %p52_p3 = scmp.ne.s32.totalorder %s15_s7, %s51_s15  ;;  %p57_p5 = scmp.lt.s32.totalorder %s51_s15, %s51_s15 }
   0xb   :  { %p58_p6 = por %p57_p5, %p56_p4 }
   0xd   :  { %p59_p7 = pnand %p58_p6, %p52_p3 }
   0xf   :  { %62 = shalt.err (!%p59_p7)
}
  0x10   :  { %17 = dma.hbm_to_vmem [thread:$0]  %s125_s0, 128, %s15_s7, [#allocation3]  }
  0x11   :  { %85 = dma.done.wait [#allocation3], 128  }
  0x12   :  { %86 = vsyncadd [#allocation3], 4294967168  ;;  %s90_s18 = smov [#allocation5]   ;;  %v21_v0 = vld [vmem:[#allocation2] sm:$0xff] }
  0x13   :  { %s30_s19 = sshll.u32 %s90_s18, 4  ;;  %v22_v1 = vrot.slane %v21_v0, 7  ;;  %s31_s19 = int_to_ptr.vmem [resolvable:$true] %s30_s19 }
  0x14   :  { %s63_s20 = scalar_lea.vmem %s31_s19, 128  ;;  %p68_p9 = scmp.lt.s32.totalorder %s31_s19, %s31_s19 }
  0x15   :  { %23 = vst [vmem:[#allocation5] sm:$0xff] %v22_v1  ;;  %p64_p8 = scmp.ne.s32.totalorder %s31_s19, %s63_s20  ;;  %p69_p10 = scmp.lt.s32.totalorder %s63_s20, %s63_s20 }
  0x17   :  { %p70_p11 = por %p69_p10, %p68_p9 }
  0x19   :  { %p71_p12 = pnand %p70_p11, %p64_p8 }
  0x1b   :  { %74 = shalt.err (!%p71_p12)
}
  0x1c   :  { %s75_s23 = scalar_lea.hbm %s126_s1, 128 }
  0x1d   :  { %p76_p13 = scmp.ne.s32.totalorder %s126_s1, %s75_s23  ;;  %p79_p0 = scmp.lt.u32.totalorder %s75_s23, %s126_s1 }
  0x1f   :  { %p81_p1 = pnand %p79_p0, %p76_p13 }
  0x21   :  { %84 = shalt.err (!%p81_p1)
}
  0x22   :  { %33 = dma.vmem_to_hbm [thread:$0]  %s31_s19, 128, %s126_s1, [#allocation4]  }
  0x23   :  { %87 = dma.done.wait [#allocation4], 128  }
  0x24   :  { %88 = vsyncadd [#allocation4], 4294967168 }
  0x25   :  { %37 = vsyncpa [#allocation3], 1 }
  0x26   :  { %38 = vsyncpa [#allocation4], 1 }

</bundles_post_ra>
